<compile_context>
chip_gen: v7x
topology: tpu7x:2x2x1
jax: 0.10.0
libtpu: 0.0.40
codegen_flags: <defaults>
</compile_context>

<pallas_src>
import math
import jax
import jax.numpy as jnp
from jax.experimental import pallas as pl
from jax.experimental.pallas import tpu as pltpu

_INV_SQRT2 = 1.0 / math.sqrt(2.0)


def _round_up(a, b):
    return (a + b - 1) // b * b


# ---------------------------------------------------------------------------
# Kernels
# ---------------------------------------------------------------------------

def ffn_kernel_resident(x_ref, w1_ref, b1_ref, w2_ref, b2_ref, o_ref):
    """Full hidden dim resident in VMEM: fused Linear->GELU->Linear, no accumulator scratch."""
    h = jnp.dot(x_ref[...], w1_ref[...], preferred_element_type=jnp.float32)
    h = h + b1_ref[...].astype(jnp.float32)
    # Exact erf-GELU (torch.nn.GELU default), f32 epilogue.
    h = 0.5 * h * (1.0 + jax.lax.erf(h * jnp.float32(_INV_SQRT2)))
    out = jnp.dot(h.astype(w2_ref.dtype), w2_ref[...],
                  preferred_element_type=jnp.float32)
    out = out + b2_ref[...].astype(jnp.float32)
    o_ref[...] = out.astype(o_ref.dtype)


def ffn_kernel_streamed(x_ref, w1_ref, b1_ref, w2_ref, b2_ref, o_ref, acc_ref):
    """Hidden axis streamed: accumulate partial second matmul into an f32 VMEM scratch."""
    k = pl.program_id(1)

    @pl.when(k == 0)
    def _():
        # Fuse the second bias into the accumulator init (added exactly once).
        acc_ref[...] = jnp.broadcast_to(b2_ref[...].astype(jnp.float32), acc_ref.shape)

    h = jnp.dot(x_ref[...], w1_ref[...], preferred_element_type=jnp.float32)
    h = h + b1_ref[...].astype(jnp.float32)
    h = 0.5 * h * (1.0 + jax.lax.erf(h * jnp.float32(_INV_SQRT2)))
    acc_ref[...] += jnp.dot(h.astype(w2_ref.dtype), w2_ref[...],
                            preferred_element_type=jnp.float32)

    @pl.when(k == pl.num_programs(1) - 1)
    def _():
        o_ref[...] = acc_ref[...].astype(o_ref.dtype)


# ---------------------------------------------------------------------------
# Wrapper
# ---------------------------------------------------------------------------

def _vmem_capacity_bytes():
    try:
        return int(pltpu.get_tpu_info().vmem_capacity_bytes)
    except Exception:
        return 64 << 20  # conservative fallback: v7x per-TensorCore VMEM


def _tile_bytes(tm, th, dim, isz_x, isz_w, isz_b, isz_o, streamed):
    """Conservative VMEM footprint estimate for one (tm, th) tiling choice."""
    need = 2 * (tm * dim * isz_x        # x tile (double-buffered)
                + dim * th * isz_w      # W1 slice
                + th * isz_b            # b1 slice
                + th * dim * isz_w      # W2 slice
                + dim * isz_b           # b2
                + tm * dim * isz_o)     # out tile
    if streamed:
        need += tm * dim * 4            # f32 accumulator scratch
    need += 2 * tm * th * 4             # f32 intermediate h + cast-copy headroom
    return need


def feed_forward(x, w1, b1, w2, b2, *, tm=None, th=None, mxu_dtype=None):
    """FeedForward forward pass: GELU(x @ W1 + b1) @ W2 + b2 (dropout p=0 omitted).

    x: (B, S, dim); w1: (dim, hidden); b1: (hidden,); w2: (hidden, dim); b2: (dim,).
    mxu_dtype: optional reduced-precision dtype (e.g. jnp.bfloat16) for the MXU feeds.
    """
    B, S, dim = x.shape
    hidden = w1.shape[1]
    N = B * S
    out_dtype = x.dtype

    # Optional reduced-precision MXU feeds (f32 accumulation is kept in-kernel).
    if mxu_dtype is not None:
        x = x.astype(mxu_dtype)
        w1 = w1.astype(mxu_dtype)
        w2 = w2.astype(mxu_dtype)

    isz = lambda a: jnp.dtype(a.dtype).itemsize
    isz_x, isz_w, isz_b = isz(x), isz(w1), isz(b1)
    isz_o = jnp.dtype(out_dtype).itemsize

    vmem_cap = _vmem_capacity_bytes()
    budget = int(0.8 * vmem_cap)        # headroom for compiler temporaries

    min_sub = 16 if isz_x == 2 else 8

    # ---- Row-tile candidates -------------------------------------------------
    if tm is not None:
        cands_tm_res = cands_tm_str = [tm]
    elif N <= 256:
        cands_tm_res = cands_tm_str = [_round_up(N, min_sub)]
    else:
        # Multiples of 128 for full MXU passes; keep >= 2 row tiles so the
        # "parallel" axis shards across v7x's two TensorCores.
        valid = [c for c in (1024, 512, 256, 128) if pl.cdiv(N, c) >= 2] or [256]
        cands_tm_str = valid                                        # streaming: max weight reuse
        cands_tm_res = sorted(valid, key=lambda c: (c != 512, -c))  # residency: 512 baseline

    # ---- Hidden-tile candidates ------------------------------------------------
    if th is not None:
        cands_th = [th]
    else:
        cands_th = [hidden] + [t for t in (2048, 1024, 512, 256, 128)
                               if t < hidden and hidden % t == 0]

    chosen = None
    # 1) Prefer fully-resident weights (th == hidden): one weight DMA per call.
    if hidden in cands_th:
        for c_tm in cands_tm_res:
            if _tile_bytes(c_tm, hidden, dim, isz_x, isz_w, isz_b, isz_o,
                           streamed=False) <= budget:
                chosen = (c_tm, hidden)
                break
    # 2) Otherwise stream the hidden axis with the largest (tm, th) that fits.
    if chosen is None:
        for c_tm in cands_tm_str:
            for c_th in cands_th:
                if c_th >= hidden:
                    continue
                if _tile_bytes(c_tm, c_th, dim, isz_x, isz_w, isz_b, isz_o,
                               streamed=True) <= budget:
                    chosen = (c_tm, c_th)
                    break
            if chosen is not None:
                break
    if chosen is None:
        # Fallback: smallest candidates (may exceed budget for pathological shapes).
        chosen = (cands_tm_str[-1], cands_th[-1])

    tm, th = chosen
    assert hidden % th == 0, "hidden must be divisible by the hidden tile"
    kt = hidden // th
    streamed = kt > 1

    Np = _round_up(N, tm)
    n_row_tiles = Np // tm

    x2 = x.reshape(N, dim)
    if Np != N:
        x2 = jnp.pad(x2, ((0, Np - N), (0, 0)))
    b1_2d = b1.reshape(1, hidden)
    b2_2d = b2.reshape(1, dim)

    need = _tile_bytes(tm, th, dim, isz_x, isz_w, isz_b, isz_o, streamed)
    # Never request more than ~90% of this generation's physical VMEM.
    vmem_limit = int(min(max(need + (8 << 20), 32 << 20), int(0.9 * vmem_cap)))

    # Weights are re-read once per row tile only when the hidden axis is streamed.
    weight_passes = n_row_tiles if streamed else 1
    cost = pl.CostEstimate(
        flops=2 * Np * dim * hidden * 2,          # two matmuls
        transcendentals=Np * hidden,              # erf
        bytes_accessed=(Np * dim * isz_x + Np * dim * isz_o
                        + weight_passes * (w1.size * isz_w + w2.size * isz_w)
                        + b1.size * isz_b + b2.size * isz_b))

    if not streamed:
        out2 = pl.pallas_call(
            ffn_kernel_resident,
            out_shape=jax.ShapeDtypeStruct((Np, dim), out_dtype),
            grid_spec=pltpu.PrefetchScalarGridSpec(
                num_scalar_prefetch=0,
                grid=(n_row_tiles,),
                in_specs=[
                    pl.BlockSpec((tm, dim), lambda i: (i, 0)),       # x row tile
                    pl.BlockSpec((dim, hidden), lambda i: (0, 0)),   # W1 (resident)
                    pl.BlockSpec((1, hidden), lambda i: (0, 0)),     # b1
                    pl.BlockSpec((hidden, dim), lambda i: (0, 0)),   # W2 (resident)
                    pl.BlockSpec((1, dim), lambda i: (0, 0)),        # b2
                ],
                out_specs=pl.BlockSpec((tm, dim), lambda i: (i, 0)),
            ),
            compiler_params=pltpu.CompilerParams(
                dimension_semantics=("parallel",),
                vmem_limit_bytes=vmem_limit),
            cost_estimate=cost,
        )(x2, w1, b1_2d, w2, b2_2d)
    else:
        out2 = pl.pallas_call(
            ffn_kernel_streamed,
            out_shape=jax.ShapeDtypeStruct((Np, dim), out_dtype),
            grid_spec=pltpu.PrefetchScalarGridSpec(
                num_scalar_prefetch=0,
                grid=(n_row_tiles, kt),
                in_specs=[
                    pl.BlockSpec((tm, dim), lambda i, k: (i, 0)),   # x row tile
                    pl.BlockSpec((dim, th), lambda i, k: (0, k)),   # W1 hidden slice
                    pl.BlockSpec((1, th), lambda i, k: (0, k)),     # b1 hidden slice
                    pl.BlockSpec((th, dim), lambda i, k: (k, 0)),   # W2 hidden slice
                    pl.BlockSpec((1, dim), lambda i, k: (0, 0)),    # b2 (full)
                ],
                out_specs=pl.BlockSpec((tm, dim), lambda i, k: (i, 0)),
                scratch_shapes=[pltpu.VMEM((tm, dim), jnp.float32)],
            ),
            compiler_params=pltpu.CompilerParams(
                dimension_semantics=("parallel", "arbitrary"),
                vmem_limit_bytes=vmem_limit),
            cost_estimate=cost,
        )(x2, w1, b1_2d, w2, b2_2d)

    if Np != N:
        out2 = out2[:N]
    return out2.reshape(B, S, dim)


# ---------------------------------------------------------------------------
# Reference & init
# ---------------------------------------------------------------------------

def init_params(key, dim, hidden_dim, dtype=jnp.float32):
    """Deterministic init mimicking PyTorch nn.Linear default U(-1/sqrt(fan_in), 1/sqrt(fan_in))."""
    k1, k2, k3, k4 = jax.random.split(key, 4)
    bound1 = 1.0 / math.sqrt(dim)
    bound2 = 1.0 / math.sqrt(hidden_dim)
    # Stored pre-transposed for x @ W (PyTorch stores (out, in); y = x @ W.T + b).
    w1 = jax.random.uniform(k1, (dim, hidden_dim), dtype, -bound1, bound1)
    b1 = jax.random.uniform(k2, (hidden_dim,), dtype, -bound1, bound1)
    w2 = jax.random.uniform(k3, (hidden_dim, dim), dtype, -bound2, bound2)
    b2 = jax.random.uniform(k4, (dim,), dtype, -bound2, bound2)
    return w1, b1, w2, b2


def feed_forward_ref(x, w1, b1, w2, b2):
    h = jnp.dot(x, w1) + b1
    h = 0.5 * h * (1.0 + jax.lax.erf(h / jnp.sqrt(2.0)))
    return jnp.dot(h, w2) + b2


if __name__ == "__main__":
    key = jax.random.PRNGKey(0)
    kx, kp = jax.random.split(key)

    # Test 1: small shapes -> fully-resident weights, exact f32 path (no scratch).
    B, S, dim, hidden_dim = 2, 8, 32, 64
    x = jax.random.normal(kx, (B, S, dim), jnp.float32)
    w1, b1, w2, b2 = init_params(kp, dim, hidden_dim)
    out = feed_forward(x, w1, b1, w2, b2)
    jax.block_until_ready(out)
    ref = feed_forward_ref(x, w1, b1, w2, b2)
    assert out.shape == (B, S, dim)
    assert jnp.allclose(out, ref, atol=1e-4, rtol=1e-4), float(jnp.max(jnp.abs(out - ref)))

    # Test 2: hidden axis streamed (explicit th) -> exercises the accumulator kernel.
    dim2, hidden2 = 128, 256
    kx2, kp2 = jax.random.split(kp)
    xb = jax.random.normal(kx2, (B, S, dim2), jnp.float32)
    w1b, b1b, w2b, b2b = init_params(kp2, dim2, hidden2)
    out2 = feed_forward(xb, w1b, b1b, w2b, b2b, th=128)
    jax.block_until_ready(out2)
    ref2 = feed_forward_ref(xb, w1b, b1b, w2b, b2b)
    assert jnp.allclose(out2, ref2, atol=1e-4, rtol=1e-4), float(jnp.max(jnp.abs(out2 - ref2)))

    # Test 3: optional reduced-precision MXU feeds (bf16) -> looser tolerance.
    out3 = feed_forward(xb, w1b, b1b, w2b, b2b, mxu_dtype=jnp.bfloat16)
    jax.block_until_ready(out3)
    assert jnp.allclose(out3, ref2, atol=5e-2, rtol=5e-2), float(jnp.max(jnp.abs(out3 - ref2)))

    print("KERNEL_OK")
</pallas_src>

<mosaic_0001>
module attributes {stable_mosaic.version = 11 : i64} {
  func.func @ffn_kernel_resident(%arg0: i32, %arg1: memref<16x32xf32, #tpu.memory_space<vmem>>, %arg2: memref<32x64xf32, #tpu.memory_space<vmem>>, %arg3: memref<1x64xf32, #tpu.memory_space<vmem>>, %arg4: memref<64x32xf32, #tpu.memory_space<vmem>>, %arg5: memref<1x32xf32, #tpu.memory_space<vmem>>, %arg6: memref<16x32xf32, #tpu.memory_space<vmem>>) attributes {dimension_semantics = [#tpu.dimension_semantics<parallel>], iteration_bounds = array<i64: 1>, scalar_prefetch = 0 : i64, scratch_operands = 0 : i64, tpu.core_type = #tpu.core_type<tc>, window_params = [{transform_indices = @transform_0, window_bounds = array<i64: 16, 32>}, {pipeline_mode = #tpu.pipeline_mode<synchronous>, transform_indices = @transform_1, window_bounds = array<i64: 32, 64>}, {pipeline_mode = #tpu.pipeline_mode<synchronous>, transform_indices = @transform_2, window_bounds = array<i64: 1, 64>}, {pipeline_mode = #tpu.pipeline_mode<synchronous>, transform_indices = @transform_3, window_bounds = array<i64: 64, 32>}, {pipeline_mode = #tpu.pipeline_mode<synchronous>, transform_indices = @transform_4, window_bounds = array<i64: 1, 32>}, {transform_indices = @transform_5, window_bounds = array<i64: 16, 32>}]} {
    %c0 = arith.constant 0 : index
    %c0_0 = arith.constant 0 : index
    %0 = vector.load %arg1[%c0, %c0_0] : memref<16x32xf32, #tpu.memory_space<vmem>>, vector<16x32xf32>
    %c0_1 = arith.constant 0 : index
    %c0_2 = arith.constant 0 : index
    %1 = vector.load %arg2[%c0_1, %c0_2] : memref<32x64xf32, #tpu.memory_space<vmem>>, vector<32x64xf32>
    %cst = arith.constant dense<0.000000e+00> : vector<16x64xf32>
    %2 = tpu.matmul %0, %1, %cst {dimension_numbers = #tpu.dot_dimension_numbers<[1], [0], [0], [1], [0, 0, 1, 1], [], []>} : vector<16x32xf32>, vector<32x64xf32>, vector<16x64xf32> -> vector<16x64xf32>
    %c0_3 = arith.constant 0 : index
    %c0_4 = arith.constant 0 : index
    %3 = vector.load %arg3[%c0_3, %c0_4] : memref<1x64xf32, #tpu.memory_space<vmem>>, vector<1x64xf32>
    %4 = vector.broadcast %3 : vector<1x64xf32> to vector<16x64xf32>
    %5 = arith.addf %2, %4 : vector<16x64xf32>
    %cst_5 = arith.constant 5.000000e-01 : f32
    %6 = vector.broadcast %cst_5 : f32 to vector<16x64xf32>
    %7 = arith.mulf %6, %5 : vector<16x64xf32>
    %cst_6 = arith.constant 0.707106769 : f32
    %8 = vector.broadcast %cst_6 : f32 to vector<16x64xf32>
    %9 = arith.mulf %5, %8 : vector<16x64xf32>
    %10 = math.erf %9 : vector<16x64xf32>
    %cst_7 = arith.constant 1.000000e+00 : f32
    %11 = vector.broadcast %cst_7 : f32 to vector<16x64xf32>
    %12 = arith.addf %11, %10 : vector<16x64xf32>
    %13 = arith.mulf %7, %12 : vector<16x64xf32>
    %c0_8 = arith.constant 0 : index
    %c0_9 = arith.constant 0 : index
    %14 = vector.load %arg4[%c0_8, %c0_9] : memref<64x32xf32, #tpu.memory_space<vmem>>, vector<64x32xf32>
    %cst_10 = arith.constant dense<0.000000e+00> : vector<16x32xf32>
    %15 = tpu.matmul %13, %14, %cst_10 {dimension_numbers = #tpu.dot_dimension_numbers<[1], [0], [0], [1], [0, 0, 1, 1], [], []>} : vector<16x64xf32>, vector<64x32xf32>, vector<16x32xf32> -> vector<16x32xf32>
    %c0_11 = arith.constant 0 : index
    %c0_12 = arith.constant 0 : index
    %16 = vector.load %arg5[%c0_11, %c0_12] : memref<1x32xf32, #tpu.memory_space<vmem>>, vector<1x32xf32>
    %17 = vector.broadcast %16 : vector<1x32xf32> to vector<16x32xf32>
    %18 = arith.addf %15, %17 : vector<16x32xf32>
    %c0_13 = arith.constant 0 : index
    %c0_14 = arith.constant 0 : index
    %19 = vector.load %arg6[%c0_13, %c0_14] : memref<16x32xf32, #tpu.memory_space<vmem>>, vector<16x32xf32>
    tpu.vector_store %arg6[%c0_13, %c0_14], %18 {strides = array<i32>} : memref<16x32xf32, #tpu.memory_space<vmem>>, vector<16x32xf32>,
    return
  }
  func.func @transform_0(%arg0: i32) -> (i32, i32) {
    %c0_i32 = arith.constant 0 : i32
    %c0_i32_0 = arith.constant 0 : i32
    return %arg0, %c0_i32 : i32, i32
  }
  func.func @transform_1(%arg0: i32) -> (i32, i32) {
    %c0_i32 = arith.constant 0 : i32
    %c0_i32_0 = arith.constant 0 : i32
    %c0_i32_1 = arith.constant 0 : i32
    return %c0_i32, %c0_i32_0 : i32, i32
  }
  func.func @transform_2(%arg0: i32) -> (i32, i32) {
    %c0_i32 = arith.constant 0 : i32
    %c0_i32_0 = arith.constant 0 : i32
    %c0_i32_1 = arith.constant 0 : i32
    return %c0_i32, %c0_i32_0 : i32, i32
  }
  func.func @transform_3(%arg0: i32) -> (i32, i32) {
    %c0_i32 = arith.constant 0 : i32
    %c0_i32_0 = arith.constant 0 : i32
    %c0_i32_1 = arith.constant 0 : i32
    return %c0_i32, %c0_i32_0 : i32, i32
  }
  func.func @transform_4(%arg0: i32) -> (i32, i32) {
    %c0_i32 = arith.constant 0 : i32
    %c0_i32_0 = arith.constant 0 : i32
    %c0_i32_1 = arith.constant 0 : i32
    return %c0_i32, %c0_i32_0 : i32, i32
  }
  func.func @transform_5(%arg0: i32) -> (i32, i32) {
    %c0_i32 = arith.constant 0 : i32
    %c0_i32_0 = arith.constant 0 : i32
    return %arg0, %c0_i32 : i32, i32
  }
}

</mosaic_0001>

<bundles_post_ra>
// kernel: tpu_custom_call.1
= control target key start
LH: loop header
LB: loop body
LE: loop exit
PB: predicated region body
PF: predicated region fallthrough
CT: control target
= control target key end

     0   :  { %vm34_vm0 = vcmask 261120   ;;  %s445_s0 = inlined_call_operand.vmem [shape: f32[16,32], index: 0, kind: input, shape index: {}]   ;;  %s446_s1 = inlined_call_operand.vmem [shape: f32[32,64], index: 1, kind: input, shape index: {}]   ;;  %s447_s2 = inlined_call_operand.vmem [shape: f32[1,64], index: 2, kind: input, shape index: {}]   ;;  %s448_s3 = inlined_call_operand.vmem [shape: f32[64,32], index: 3, kind: input, shape index: {}]   ;;  %s449_s4 = inlined_call_operand.vmem [shape: f32[1,32], index: 4, kind: input, shape index: {}]   ;;  %s450_s5 = inlined_call_operand.hbm [shape: f32[16,32], index: 5, kind: output, shape index: {}]  }
   0x1   :  { %v23_v0 = vld [vmem:[%s446_s1] sm:$0xff]  ;;  %v24_v1 = vld [vmem:[%s446_s1 + $0x8] sm:$0xff]  ;;  %v25_v2 = vld [vmem:[%s446_s1 + $0x10] sm:$0xff] }
   0x2   :  { %v293_v3 = vpack.c.bf16 %v24_v1, %v23_v0  ;;  %v26_v4 = vld [vmem:[%s446_s1 + $0x18] sm:$0xff]  ;;  %v21_v5 = vld [vmem:[%s445_s0] sm:$0xff] }
   0x3   :  { %v297_v6 = vpack.c.bf16 %v26_v4, %v25_v2  ;;  %271 = vmatprep.mubr.msk.f32.mxu0 %vm34_vm0, %v21_v5 }
   0x4   :  { %10 = vsyncpa [#allocation3], 0  ;;  %294 = vmatprep.subr.bf16.mxu0 %v293_v3  ;;  %v22_v7 = vld [vmem:[%s445_s0 + $0x8] sm:$0xff]  ;;  %v126_v8 = vld [vmem:[%s448_s3] sm:$0xff]  ;;  %vm141_vm1 = vcmask 523264   ;;  %s348_s21 = smov [#allocation2]  }
   0x5   :  { %296 = vmatpush3.bf16.msra.mxu0 %v293_v3  ;;  %v127_v9 = vld [vmem:[%s448_s3 + $0x8] sm:$0xff]  ;;  %v128_v11 = vld [vmem:[%s448_s3 + $0x10] sm:$0xff]  ;;  %v129_v12 = vld [vmem:[%s448_s3 + $0x18] sm:$0xff]  ;;  %s230_s22 = sshll.u32 %s348_s21, 4  ;;  %s231_s22 = int_to_ptr.vmem [resolvable:$true] %s230_s22 }
   0x6   :  { %298 = vmatprep.subr.bf16.mxu0 %v297_v6  ;;  %v301_v10 = vpack.c.bf16 %v127_v9, %v126_v8  ;;  %v305_v13 = vpack.c.bf16 %v129_v12, %v128_v11  ;;  %v130_v14 = vld [vmem:[%s448_s3 + $0x20] sm:$0xff]  ;;  %v131_v15 = vld [vmem:[%s448_s3 + $0x28] sm:$0xff]  ;;  %v132_v17 = vld [vmem:[%s448_s3 + $0x30] sm:$0xff]  ;;  %s324_s23 = scalar_lea.vmem %s231_s22, 256  ;;  %p329_p1 = scmp.lt.s32.totalorder %s231_s22, %s231_s22 }
   0x7   :  { %v309_v16 = vpack.c.bf16 %v131_v15, %v130_v14  ;;  %v133_v18 = vld [vmem:[%s448_s3 + $0x38] sm:$0xff]  ;;  %v241_v20 = vld [vmem:[%s447_s2] ss:$0 sm:$0xff]  ;;  %p325_p0 = scmp.ne.s32.totalorder %s231_s22, %s324_s23  ;;  %p330_p2 = scmp.lt.s32.totalorder %s324_s23, %s324_s23 }
   0x8   :  { %302 = vmatprep.subr.bf16.mxu1 %v301_v10  ;;  %v313_v19 = vpack.c.bf16 %v133_v18, %v132_v17  ;;  %v244_v35 = vld [vmem:[%s449_s4] ss:$0 sm:$0xff] }
   0x9   :  { %300 = vmatpush3.bf16.msra.mxu0 %v297_v6  ;;  %304 = vmatpush3.bf16.msra.mxu1 %v301_v10  ;;  %p331_p3 = por %p330_p2, %p329_p1 }
   0xa   :  { %306 = vmatprep.subr.bf16.mxu1 %v305_v13 }
   0xb   :  { %p332_p4 = pnand %p331_p3, %p325_p0 }
   0xc   :  { %272 = vmatmul.mubr.msk.f32.vlgmr.msra.gmra.mrb[0].mxu0 %vm34_vm0, %v22_v7 }
   0xd   :  { %308 = vmatpush3.bf16.msra.mxu1 %v305_v13 }
   0xe   :  { %310 = vmatprep.subr.bf16.mxu1 %v309_v16 }
  0x11   :  { %312 = vmatpush3.bf16.msra.mxu1 %v309_v16 }
  0x12   :  { %314 = vmatprep.subr.bf16.mxu1 %v313_v19 }
  0x15   :  { %316 = vmatpush3.bf16.msra.mxu1 %v313_v19 }
  0xdf   :  { %v273_v21 = vpop.f32.mrb[0].mxu0 }
  0xe0   :  { %v113_v22 = vadd.f32 %v273_v21, %v241_v20  ;;  %v107_v23 = vpop.f32.mrb[1].mxu0 }
  0xe1   :  { %v108_v24 = vadd.f32 %v241_v20, %v107_v23 }
  0xe2   :  { %v119_v25 = vmul.f32 0.70710677, %v113_v22  ;;  %v117_v32 = vmul.f32 0.5, %v113_v22 }
  0xe3   :  { %v118_v26 = vmul.f32 0.70710677, %v108_v24  ;;  %v116_v30 = vmul.f32 0.5, %v108_v24 }
  0xe4   :  { %320 = verf.f32 %v119_v25 }
  0xe5   :  { %322 = verf.f32 %v118_v26 }
  0xee   :  { %v321_v27 = vpop.eup %320 }
  0xef   :  { %v323_v28 = vpop.eup %322  ;;  %v123_v29 = vadd.f32 1.0, %v321_v27 }
  0xf0   :  { %v122_v31 = vadd.f32 1.0, %v323_v28 }
  0xf1   :  { %v125_v34 = vmul.f32 %v123_v29, %v117_v32 }
  0xf2   :  { %v124_v33 = vmul.f32 %v122_v31, %v116_v30 }
  0xf4   :  { %290 = vmatprep.mubr.msk.f32.mxu1 %vm141_vm1, %v124_v33 }
  0xf5   :  { %291 = vmatmul.mubr.msk.f32.vlgmr.msra.gmra.mrb[0].mxu1 %vm141_vm1, %v125_v34 }
 0x1c8   :  { %v292_v36 = vpop.f32.mrb[0].mxu1 }
 0x1c9   :  { %v220_v37 = vadd.f32 %v292_v36, %v244_v35  ;;  %v214_v38 = vpop.f32.mrb[1].mxu1 }
 0x1ca   :  { %v215_v39 = vadd.f32 %v244_v35, %v214_v38 }
 0x1cb   :  { %224 = vst.msk [vmem:[#allocation2 + $0x8] sm:$0xff] %vm34_vm0, %v220_v37 }
 0x1cc   :  { %223 = vst.msk [vmem:[#allocation2] sm:$0xff] %vm34_vm0, %v215_v39 }
 0x1cd   :  { %335 = shalt.err (!%p332_p4)
}
 0x1ce   :  { %s336_s25 = scalar_lea.hbm %s450_s5, 256 }
 0x1cf   :  { %p337_p5 = scmp.ne.s32.totalorder %s450_s5, %s336_s25  ;;  %p340_p6 = scmp.lt.u32.totalorder %s336_s25, %s450_s5 }
 0x1d1   :  { %p342_p7 = pnand %p340_p6, %p337_p5 }
 0x1d3   :  { %345 = shalt.err (!%p342_p7)
}
 0x1d4   :  { %s349_s30 = smov 128   ;;  %s350_s1 = smov 8  }
 0x1d5   :  { %236 = dma.vmem_to_hbm [thread:$0]  %s231_s22, 256, %s450_s5, [#allocation3], %s349_s30, %s349_s30, %s350_s1  }
 0x1d6   :  { %346 = dma.done.wait [#allocation3], 256  }
 0x1d7   :  { %347 = vsyncadd [#allocation3], 4294967040 }
 0x1d8   :  { %240 = vsyncpa [#allocation3], 1 }

</bundles_post_ra>
